<compile_context>
chip_gen: v7x
topology: tpu7x:2x2x1
jax: 0.10.0
libtpu: 0.0.40
codegen_flags: <defaults>
</compile_context>

<pallas_src>
import functools

import jax
import jax.numpy as jnp
import numpy as np
from jax.experimental import pallas as pl
from jax.experimental.pallas import tpu as pltpu

# ----------------------------- config -----------------------------------
B = 2             # batch
C_IN = 4          # input channels
H = W = 16        # spatial
N_FEATURES = 32   # stand-in for efficientnet_b3 classifier.in_features (=1536)
NUM_CLASSES = 10  # stand-in for ModelConfig.num_classes

LANE = 128        # TPU lane width
SUBLANE = 8       # TPU f32 sublane width


def _round_up(n, m):
    return ((n + m - 1) // m) * m


# ------------------ fused stem + pool + classifier kernel ----------------
def _fused_kernel(b, hw, x_ref, ws_ref, bs_ref, wc_ref, bc_ref, o_ref):
    # x_ref : (R, C_PAD)       channels-last pixels, R = b*hw (zero-padded lanes)
    # ws_ref: (C_PAD, F_PAD)   1x1-conv stub weight (zero-padded)
    # bs_ref: (1, F_PAD)
    # wc_ref: (F_PAD, NC_PAD)  classifier weight (torch weight.T, zero-padded)
    # bc_ref: (1, NC_PAD)
    # o_ref : (B, NC_PAD)      logits (NC padding sliced off outside)
    f_pad = ws_ref.shape[1]

    feats = jnp.dot(x_ref[...], ws_ref[...],
                    preferred_element_type=jnp.float32)          # (R, F_PAD) MXU
    feats = jnp.maximum(feats + bs_ref[...], 0.0)                # VPU, lane-dense

    # Global average pool: sublane-split reshape (tile-aligned, free) + XLU
    # sublane reduce.  XLU is otherwise idle in this kernel, and this removes
    # the pooling-matrix input DMA entirely.
    pooled = jnp.mean(feats.reshape(b, hw, f_pad), axis=1)       # (B, F_PAD)

    logits = jnp.dot(pooled, wc_ref[...],
                     preferred_element_type=jnp.float32) + bc_ref[...]
    o_ref[...] = logits.astype(o_ref.dtype)


# ----------------------------- full model --------------------------------
def custom_model_forward(x_nchw, padded):
    """Jitted hot path: x layout transform + ONE fused pallas_call."""
    b, c, h, w = x_nchw.shape
    hw = h * w
    r = b * hw

    c_pad, f_pad = padded["w_stem"].shape
    nc_pad = padded["w_cls"].shape[1]

    # NCHW -> NHWC -> (B*H*W, C): channels-last rows for the 1x1-conv stub,
    # lane-padded 4 -> 8 (fuses with the transpose in XLA).
    x_rows = jnp.transpose(x_nchw, (0, 2, 3, 1)).reshape(r, c)
    x_rows = jnp.pad(x_rows, ((0, 0), (0, c_pad - c)))

    kernel = functools.partial(_fused_kernel, b, hw)

    out = pl.pallas_call(
        kernel,
        out_shape=jax.ShapeDtypeStruct((b, nc_pad), jnp.float32),
        grid_spec=pltpu.PrefetchScalarGridSpec(
            num_scalar_prefetch=0,
            grid=(1,),  # everything fits VMEM (<1 MB); one step, one DMA set
            in_specs=[
                pl.BlockSpec((r, c_pad), lambda i: (0, 0)),
                pl.BlockSpec((c_pad, f_pad), lambda i: (0, 0)),
                pl.BlockSpec((1, f_pad), lambda i: (0, 0)),
                pl.BlockSpec((f_pad, nc_pad), lambda i: (0, 0)),
                pl.BlockSpec((1, nc_pad), lambda i: (0, 0)),
            ],
            out_specs=pl.BlockSpec((b, nc_pad), lambda i: (0, 0)),
        ),
        # single grid step -> single TensorCore on v7x; fine at this size
        # (launch/DMA-overhead bound, not compute bound).
        compiler_params=pltpu.CompilerParams(
            dimension_semantics=("arbitrary",)),
    )(x_rows, padded["w_stem"], padded["b_stem"],
      padded["w_cls"], padded["b_cls"])

    return out[:, :NUM_CLASSES]


def init_params(key):
    k1, k2, k3, k4 = jax.random.split(key, 4)
    return {
        # backbone stub (1x1 conv): (C_IN, F) weight + (F,) bias
        "w_stem": jax.random.normal(k1, (C_IN, N_FEATURES), jnp.float32) * 0.1,
        "b_stem": jax.random.normal(k2, (N_FEATURES,), jnp.float32) * 0.01,
        # classifier Linear(F, NC): stored as (F, NC) = torch weight.T
        "w_cls": jax.random.normal(k3, (N_FEATURES, NUM_CLASSES),
                                   jnp.float32) * 0.1,
        "b_cls": jax.random.normal(k4, (NUM_CLASSES,), jnp.float32) * 0.01,
    }


def prepare_params(params):
    """One-time (outside jit) zero-padding of weights to lane/sublane-dense
    shapes.  Padded feature lanes stay zero through bias+ReLU and contribute
    nothing through the zero-padded classifier rows."""
    c, f = params["w_stem"].shape
    nc = params["w_cls"].shape[1]
    c_pad = _round_up(max(c, SUBLANE), SUBLANE)
    f_pad = _round_up(f, LANE)
    nc_pad = _round_up(nc, LANE)

    w_stem = np.zeros((c_pad, f_pad), np.float32)
    w_stem[:c, :f] = np.asarray(params["w_stem"])
    b_stem = np.zeros((1, f_pad), np.float32)
    b_stem[0, :f] = np.asarray(params["b_stem"])
    w_cls = np.zeros((f_pad, nc_pad), np.float32)
    w_cls[:f, :nc] = np.asarray(params["w_cls"])
    b_cls = np.zeros((1, nc_pad), np.float32)
    b_cls[0, :nc] = np.asarray(params["b_cls"])

    return {
        "w_stem": jnp.asarray(w_stem),
        "b_stem": jnp.asarray(b_stem),
        "w_cls": jnp.asarray(w_cls),
        "b_cls": jnp.asarray(b_cls),
    }


if __name__ == "__main__":
    key = jax.random.PRNGKey(0)
    kx, kp = jax.random.split(key)
    x = jax.random.normal(kx, (B, C_IN, H, W), jnp.float32)
    params = init_params(kp)
    padded = prepare_params(params)   # constant work hoisted out of hot path

    fwd = jax.jit(custom_model_forward)
    out = jax.block_until_ready(fwd(x, padded))

    # sanity: reference in plain JAX
    feats_ref = jnp.maximum(
        jnp.einsum("bchw,cf->bhwf", x, params["w_stem"]) + params["b_stem"],
        0.0)
    pooled_ref = feats_ref.reshape(B, H * W, N_FEATURES).mean(axis=1)
    out_ref = pooled_ref @ params["w_cls"] + params["b_cls"]
    assert out.shape == (B, NUM_CLASSES)
    assert jnp.allclose(out, out_ref, atol=1e-4, rtol=1e-4)

    print("KERNEL_OK")
</pallas_src>

<mosaic_0001>
module attributes {stable_mosaic.version = 11 : i64} {
  func.func @_fused_kernel(%arg0: i32, %arg1: memref<512x8xf32, #tpu.memory_space<vmem>>, %arg2: memref<8x128xf32, #tpu.memory_space<vmem>>, %arg3: memref<1x128xf32, #tpu.memory_space<vmem>>, %arg4: memref<128x128xf32, #tpu.memory_space<vmem>>, %arg5: memref<1x128xf32, #tpu.memory_space<vmem>>, %arg6: memref<2x128xf32, #tpu.memory_space<vmem>>) attributes {dimension_semantics = [#tpu.dimension_semantics<arbitrary>], iteration_bounds = array<i64: 1>, scalar_prefetch = 0 : i64, scratch_operands = 0 : i64, tpu.core_type = #tpu.core_type<tc>, window_params = [{pipeline_mode = #tpu.pipeline_mode<synchronous>, transform_indices = @transform_0, window_bounds = array<i64: 512, 8>}, {pipeline_mode = #tpu.pipeline_mode<synchronous>, transform_indices = @transform_1, window_bounds = array<i64: 8, 128>}, {pipeline_mode = #tpu.pipeline_mode<synchronous>, transform_indices = @transform_2, window_bounds = array<i64: 1, 128>}, {pipeline_mode = #tpu.pipeline_mode<synchronous>, transform_indices = @transform_3, window_bounds = array<i64: 128, 128>}, {pipeline_mode = #tpu.pipeline_mode<synchronous>, transform_indices = @transform_4, window_bounds = array<i64: 1, 128>}, {pipeline_mode = #tpu.pipeline_mode<synchronous>, transform_indices = @transform_5, window_bounds = array<i64: 2, 128>}]} {
    %c0 = arith.constant 0 : index
    %c0_0 = arith.constant 0 : index
    %0 = vector.load %arg1[%c0, %c0_0] : memref<512x8xf32, #tpu.memory_space<vmem>>, vector<512x8xf32>
    %c0_1 = arith.constant 0 : index
    %c0_2 = arith.constant 0 : index
    %1 = vector.load %arg2[%c0_1, %c0_2] : memref<8x128xf32, #tpu.memory_space<vmem>>, vector<8x128xf32>
    %cst = arith.constant dense<0.000000e+00> : vector<512x128xf32>
    %2 = tpu.matmul %0, %1, %cst {dimension_numbers = #tpu.dot_dimension_numbers<[1], [0], [0], [1], [0, 0, 1, 1], [], []>} : vector<512x8xf32>, vector<8x128xf32>, vector<512x128xf32> -> vector<512x128xf32>
    %c0_3 = arith.constant 0 : index
    %c0_4 = arith.constant 0 : index
    %3 = vector.load %arg3[%c0_3, %c0_4] : memref<1x128xf32, #tpu.memory_space<vmem>>, vector<1x128xf32>
    %4 = vector.broadcast %3 : vector<1x128xf32> to vector<512x128xf32>
    %5 = arith.addf %2, %4 : vector<512x128xf32>
    %cst_5 = arith.constant 0.000000e+00 : f32
    %6 = vector.broadcast %cst_5 : f32 to vector<512x128xf32>
    %7 = arith.maximumf %5, %6 : vector<512x128xf32>
    %8 = vector.shape_cast %7 : vector<512x128xf32> to vector<2x256x128xf32>
    %cst_6 = arith.constant dense<0.000000e+00> : vector<2x128xf32>
    %9 = vector.multi_reduction <add>, %8, %cst_6 [1] : vector<2x256x128xf32> to vector<2x128xf32>
    %cst_7 = arith.constant 2.560000e+02 : f32
    %10 = vector.broadcast %cst_7 : f32 to vector<2x128xf32>
    %11 = arith.divf %9, %10 : vector<2x128xf32>
    %c0_8 = arith.constant 0 : index
    %c0_9 = arith.constant 0 : index
    %12 = vector.load %arg4[%c0_8, %c0_9] : memref<128x128xf32, #tpu.memory_space<vmem>>, vector<128x128xf32>
    %cst_10 = arith.constant dense<0.000000e+00> : vector<2x128xf32>
    %13 = tpu.matmul %11, %12, %cst_10 {dimension_numbers = #tpu.dot_dimension_numbers<[1], [0], [0], [1], [0, 0, 1, 1], [], []>} : vector<2x128xf32>, vector<128x128xf32>, vector<2x128xf32> -> vector<2x128xf32>
    %c0_11 = arith.constant 0 : index
    %c0_12 = arith.constant 0 : index
    %14 = vector.load %arg5[%c0_11, %c0_12] : memref<1x128xf32, #tpu.memory_space<vmem>>, vector<1x128xf32>
    %15 = vector.broadcast %14 : vector<1x128xf32> to vector<2x128xf32>
    %16 = arith.addf %13, %15 : vector<2x128xf32>
    %c0_13 = arith.constant 0 : index
    %c0_14 = arith.constant 0 : index
    %17 = vector.load %arg6[%c0_13, %c0_14] : memref<2x128xf32, #tpu.memory_space<vmem>>, vector<2x128xf32>
    tpu.vector_store %arg6[%c0_13, %c0_14], %16 {strides = array<i32>} : memref<2x128xf32, #tpu.memory_space<vmem>>, vector<2x128xf32>,
    return
  }
  func.func @transform_0(%arg0: i32) -> (i32, i32) {
    %c0_i32 = arith.constant 0 : i32
    %c0_i32_0 = arith.constant 0 : i32
    %c0_i32_1 = arith.constant 0 : i32
    return %c0_i32, %c0_i32_0 : i32, i32
  }
  func.func @transform_1(%arg0: i32) -> (i32, i32) {
    %c0_i32 = arith.constant 0 : i32
    %c0_i32_0 = arith.constant 0 : i32
    %c0_i32_1 = arith.constant 0 : i32
    return %c0_i32, %c0_i32_0 : i32, i32
  }
  func.func @transform_2(%arg0: i32) -> (i32, i32) {
    %c0_i32 = arith.constant 0 : i32
    %c0_i32_0 = arith.constant 0 : i32
    %c0_i32_1 = arith.constant 0 : i32
    return %c0_i32, %c0_i32_0 : i32, i32
  }
  func.func @transform_3(%arg0: i32) -> (i32, i32) {
    %c0_i32 = arith.constant 0 : i32
    %c0_i32_0 = arith.constant 0 : i32
    %c0_i32_1 = arith.constant 0 : i32
    return %c0_i32, %c0_i32_0 : i32, i32
  }
  func.func @transform_4(%arg0: i32) -> (i32, i32) {
    %c0_i32 = arith.constant 0 : i32
    %c0_i32_0 = arith.constant 0 : i32
    %c0_i32_1 = arith.constant 0 : i32
    return %c0_i32, %c0_i32_0 : i32, i32
  }
  func.func @transform_5(%arg0: i32) -> (i32, i32) {
    %c0_i32 = arith.constant 0 : i32
    %c0_i32_0 = arith.constant 0 : i32
    %c0_i32_1 = arith.constant 0 : i32
    return %c0_i32, %c0_i32_0 : i32, i32
  }
}

</mosaic_0001>

<bundles_post_ra>
// kernel: custom_model_forward.1
= control target key start
LH: loop header
LB: loop body
LE: loop exit
PB: predicated region body
PF: predicated region fallthrough
CT: control target
= control target key end

     0   :  { %vm93_vm0 = vcmask 64512   ;;  %s1779_s0 = inlined_call_operand.vmem [shape: f32[512,8], index: 0, kind: input, shape index: {}]   ;;  %s1780_s1 = inlined_call_operand.vmem [shape: f32[8,128], index: 1, kind: input, shape index: {}]   ;;  %s1781_s2 = inlined_call_operand.vmem [shape: f32[1,128], index: 2, kind: input, shape index: {}]   ;;  %s1782_s3 = inlined_call_operand.vmem [shape: f32[128,128], index: 3, kind: input, shape index: {}]   ;;  %s1783_s4 = inlined_call_operand.vmem [shape: f32[1,128], index: 4, kind: input, shape index: {}]   ;;  %s1784_s5 = inlined_call_operand.hbm [shape: f32[2,128], index: 5, kind: output, shape index: {}]  }
   0x1   :  { %v85_v0 = vld [vmem:[%s1780_s1] sm:$0xff]  ;;  %v22_v2 = vld [vmem:[%s1779_s0 + $0x8] sm:$0xff]  ;;  %v23_v3 = vld [vmem:[%s1779_s0 + $0x10] sm:$0xff] }
   0x2   :  { %v21_v1 = vld [vmem:[%s1779_s0] sm:$0xff]  ;;  %1073 = vmatprep.subr.mxu0 %v85_v0  ;;  %1230 = vmatprep.subr.mxu1 %v85_v0  ;;  %v24_v4 = vld [vmem:[%s1779_s0 + $0x18] sm:$0xff]  ;;  %v26_v6 = vld [vmem:[%s1779_s0 + $0x28] sm:$0xff] }
   0x3   :  { %1075 = vmatprep.mubr.msk.f32.mxu0 %vm93_vm0, %v21_v1  ;;  %1074 = vmatpush3.msra.mxu0 %v85_v0  ;;  %v25_v5 = vld [vmem:[%s1779_s0 + $0x20] sm:$0xff]  ;;  %v27_v7 = vld [vmem:[%s1779_s0 + $0x30] sm:$0xff]  ;;  %v28_v9 = vld [vmem:[%s1779_s0 + $0x38] sm:$0xff] }
   0x4   :  { %1076 = vmatmul.mubr.msk.f32.vlgmr.msra.gmra.mrb[0].mxu0 %vm93_vm0, %v22_v2  ;;  %1231 = vmatpush3.msra.mxu1 %v85_v0  ;;  %v55_v8 = vld [vmem:[%s1779_s0 + $0x110] sm:$0xff]  ;;  %v56_v10 = vld [vmem:[%s1779_s0 + $0x118] sm:$0xff]  ;;  %v57_v11 = vld [vmem:[%s1779_s0 + $0x120] sm:$0xff] }
   0x5   :  { %1078 = vmatprep.mubr.msk.f32.mxu0 %vm93_vm0, %v23_v3  ;;  %1126 = vmatprep.mubr.msk.f32.mxu1 %vm93_vm0, %v55_v8  ;;  %v29_v12 = vld [vmem:[%s1779_s0 + $0x40] sm:$0xff]  ;;  %v58_v13 = vld [vmem:[%s1779_s0 + $0x128] sm:$0xff]  ;;  %v59_v14 = vld [vmem:[%s1779_s0 + $0x130] sm:$0xff] }
   0x6   :  { %1127 = vmatmul.mubr.msk.f32.vlgmr.msra.gmra.mrb[0].mxu1 %vm93_vm0, %v56_v10  ;;  %v30_v15 = vld [vmem:[%s1779_s0 + $0x48] sm:$0xff]  ;;  %v31_v16 = vld [vmem:[%s1779_s0 + $0x50] sm:$0xff]  ;;  %v60_v17 = vld [vmem:[%s1779_s0 + $0x138] sm:$0xff] }
   0x7   :  { %1129 = vmatprep.mubr.msk.f32.mxu1 %vm93_vm0, %v57_v11  ;;  %v61_v18 = vld [vmem:[%s1779_s0 + $0x140] sm:$0xff]  ;;  %v32_v19 = vld [vmem:[%s1779_s0 + $0x58] sm:$0xff] }
   0x8   :  { %1079 = vmatmul.mubr.msk.f32.gmra.mrb[2].mxu0 %vm93_vm0, %v24_v4  ;;  %v33_v20 = vld [vmem:[%s1779_s0 + $0x60] sm:$0xff] }
   0x9   :  { %1081 = vmatprep.mubr.msk.f32.mxu0 %vm93_vm0, %v25_v5 }
   0xa   :  { %1130 = vmatmul.mubr.msk.f32.gmra.mrb[2].mxu1 %vm93_vm0, %v58_v13 }
   0xb   :  { %1132 = vmatprep.mubr.msk.f32.mxu1 %vm93_vm0, %v59_v14 }
   0xc   :  { %1082 = vmatmul.mubr.msk.f32.gmra.mrb[4].mxu0 %vm93_vm0, %v26_v6 }
   0xd   :  { %1084 = vmatprep.mubr.msk.f32.mxu0 %vm93_vm0, %v27_v7 }
   0xe   :  { %1133 = vmatmul.mubr.msk.f32.gmra.mrb[4].mxu1 %vm93_vm0, %v60_v17 }
  0x10   :  { %1085 = vmatmul.mubr.msk.f32.gmra.mrb[6].mxu0 %vm93_vm0, %v28_v9 }
  0x11   :  { %1087 = vmatprep.mubr.msk.f32.mxu0 %vm93_vm0, %v29_v12 }
  0x14   :  { %1088 = vmatmul.mubr.msk.f32.gmra.mrb[8].mxu0 %vm93_vm0, %v30_v15 }
  0x15   :  { %1090 = vmatprep.mubr.msk.f32.mxu0 %vm93_vm0, %v31_v16 }
  0x16   :  { %10 = vsyncpa [#allocation3], 0  ;;  %1135 = vmatprep.mubr.msk.f32.mxu1 %vm93_vm0, %v61_v18  ;;  %v62_v21 = vld [vmem:[%s1779_s0 + $0x148] sm:$0xff]  ;;  %v63_v22 = vld [vmem:[%s1779_s0 + $0x150] sm:$0xff]  ;;  %v1260_v3 = vmov 0.0|0.0   ;;  %vm1261_vm1 = vmmov 0  }
  0x17   :  { %v34_v23 = vld [vmem:[%s1779_s0 + $0x68] sm:$0xff]  ;;  %v35_v24 = vld [vmem:[%s1779_s0 + $0x70] sm:$0xff]  ;;  %1136 = vmatmul.mubr.msk.f32.gmra.mrb[6].mxu1 %vm93_vm0, %v62_v21  ;;  %v64_v25 = vld [vmem:[%s1779_s0 + $0x158] sm:$0xff]  ;;  %1206 = vmatprep.subr.bf16.mxu1 %v1260_v3  ;;  %vm837_vm2 = vcmask 1041409   ;;  %s1263_s24 = smov [#allocation2]  }
  0x18   :  { %1091 = vmatmul.mubr.msk.f32.gmra.mrb[10].mxu0 %vm93_vm0, %v32_v19  ;;  %1138 = vmatprep.mubr.msk.f32.mxu1 %vm93_vm0, %v63_v22  ;;  %v65_v26 = vld [vmem:[%s1779_s0 + $0x160] sm:$0xff]  ;;  %v36_v27 = vld [vmem:[%s1779_s0 + $0x78] sm:$0xff]  ;;  %v66_v29 = vld [vmem:[%s1779_s0 + $0x168] sm:$0xff]  ;;  %s917_s25 = sshll.u32 %s1263_s24, 4  ;;  %s918_s25 = int_to_ptr.vmem [resolvable:$true] %s917_s25 }
  0x19   :  { %1093 = vmatprep.mubr.msk.f32.mxu0 %vm93_vm0, %v33_v20  ;;  %v37_v28 = vld [vmem:[%s1779_s0 + $0x80] sm:$0xff]  ;;  %v67_v30 = vld [vmem:[%s1779_s0 + $0x170] sm:$0xff]  ;;  %v38_v31 = vld [vmem:[%s1779_s0 + $0x88] sm:$0xff]  ;;  %s1236_s1 = scalar_lea.vmem %s918_s25, 32  ;;  %p1241_p1 = scmp.lt.s32.totalorder %s918_s25, %s918_s25 }
  0x1a   :  { %v39_v32 = vld [vmem:[%s1779_s0 + $0x90] sm:$0xff]  ;;  %v68_v33 = vld [vmem:[%s1779_s0 + $0x178] sm:$0xff]  ;;  %v69_v34 = vld [vmem:[%s1779_s0 + $0x180] sm:$0xff]  ;;  %p1237_p0 = scmp.ne.s32.totalorder %s918_s25, %s1236_s1  ;;  %p1242_p2 = scmp.lt.s32.totalorder %s1236_s1, %s1236_s1 }
  0x1b   :  { %1139 = vmatmul.mubr.msk.f32.gmra.mrb[8].mxu1 %vm93_vm0, %v64_v25  ;;  %v40_v35 = vld [vmem:[%s1779_s0 + $0x98] sm:$0xff]  ;;  %v41_v36 = vld [vmem:[%s1779_s0 + $0xa0] sm:$0xff]  ;;  %v70_v37 = vld [vmem:[%s1779_s0 + $0x188] sm:$0xff] }
  0x1c   :  { %1094 = vmatmul.mubr.msk.f32.gmra.mrb[12].mxu0 %vm93_vm0, %v34_v23  ;;  %1141 = vmatprep.mubr.msk.f32.mxu1 %vm93_vm0, %v65_v26  ;;  %v71_v38 = vld [vmem:[%s1779_s0 + $0x190] sm:$0xff]  ;;  %v42_v39 = vld [vmem:[%s1779_s0 + $0xa8] sm:$0xff]  ;;  %v72_v41 = vld [vmem:[%s1779_s0 + $0x198] sm:$0xff]  ;;  %p1243_p3 = por %p1242_p2, %p1241_p1 }
  0x1d   :  { %1096 = vmatprep.mubr.msk.f32.mxu0 %vm93_vm0, %v35_v24  ;;  %v43_v40 = vld [vmem:[%s1779_s0 + $0xb0] sm:$0xff]  ;;  %v73_v42 = vld [vmem:[%s1779_s0 + $0x1a0] sm:$0xff]  ;;  %v44_v43 = vld [vmem:[%s1779_s0 + $0xb8] sm:$0xff] }
  0x1e   :  { %v45_v44 = vld [vmem:[%s1779_s0 + $0xc0] sm:$0xff]  ;;  %v74_v45 = vld [vmem:[%s1779_s0 + $0x1a8] sm:$0xff]  ;;  %v75_v46 = vld [vmem:[%s1779_s0 + $0x1b0] sm:$0xff]  ;;  %p1244_p4 = pnand %p1243_p3, %p1237_p0 }
  0x1f   :  { %1142 = vmatmul.mubr.msk.f32.gmra.mrb[10].mxu1 %vm93_vm0, %v66_v29  ;;  %v46_v47 = vld [vmem:[%s1779_s0 + $0xc8] sm:$0xff]  ;;  %v47_v48 = vld [vmem:[%s1779_s0 + $0xd0] sm:$0xff]  ;;  %v76_v49 = vld [vmem:[%s1779_s0 + $0x1b8] sm:$0xff] }
  0x20   :  { %1097 = vmatmul.mubr.msk.f32.gmra.mrb[14].mxu0 %vm93_vm0, %v36_v27  ;;  %1144 = vmatprep.mubr.msk.f32.mxu1 %vm93_vm0, %v67_v30  ;;  %v77_v50 = vld [vmem:[%s1779_s0 + $0x1c0] sm:$0xff]  ;;  %v48_v51 = vld [vmem:[%s1779_s0 + $0xd8] sm:$0xff]  ;;  %v78_v53 = vld [vmem:[%s1779_s0 + $0x1c8] sm:$0xff] }
  0x21   :  { %1099 = vmatprep.mubr.msk.f32.mxu0 %vm93_vm0, %v37_v28  ;;  %v49_v52 = vld [vmem:[%s1779_s0 + $0xe0] sm:$0xff]  ;;  %v79_v54 = vld [vmem:[%s1779_s0 + $0x1d0] sm:$0xff]  ;;  %v50_v55 = vld [vmem:[%s1779_s0 + $0xe8] sm:$0xff] }
  0x22   :  { %v51_v56 = vld [vmem:[%s1779_s0 + $0xf0] sm:$0xff]  ;;  %v80_v57 = vld [vmem:[%s1779_s0 + $0x1d8] sm:$0xff]  ;;  %v81_v58 = vld [vmem:[%s1779_s0 + $0x1e0] sm:$0xff] }
  0x23   :  { %1145 = vmatmul.mubr.msk.f32.gmra.mrb[12].mxu1 %vm93_vm0, %v68_v33  ;;  %v52_v59 = vld [vmem:[%s1779_s0 + $0xf8] sm:$0xff]  ;;  %v53_v60 = vld [vmem:[%s1779_s0 + $0x100] sm:$0xff]  ;;  %v82_v61 = vld [vmem:[%s1779_s0 + $0x1e8] sm:$0xff] }
  0x24   :  { %1100 = vmatmul.mubr.msk.f32.gmra.mrb[16].mxu0 %vm93_vm0, %v38_v31  ;;  %1147 = vmatprep.mubr.msk.f32.mxu1 %vm93_vm0, %v69_v34  ;;  %v83_v62 = vld [vmem:[%s1779_s0 + $0x1f0] sm:$0xff]  ;;  %v54_v63 = vld [vmem:[%s1779_s0 + $0x108] sm:$0xff]  ;;  %v84_v0 = vld [vmem:[%s1779_s0 + $0x1f8] sm:$0xff] }
  0x25   :  { %1102 = vmatprep.mubr.msk.f32.mxu0 %vm93_vm0, %v39_v32  ;;  %v812_v1 = vld [vmem:[%s1782_s3] sm:$0xff]  ;;  %v813_v2 = vld [vmem:[%s1782_s3 + $0x8] sm:$0xff]  ;;  %v814_v5 = vld [vmem:[%s1782_s3 + $0x10] sm:$0xff] }
  0x26   :  { %v1207_v4 = vpack.c.bf16 %v813_v2, %v812_v1  ;;  %v815_v6 = vld [vmem:[%s1782_s3 + $0x18] sm:$0xff]  ;;  %v816_v8 = vld [vmem:[%s1782_s3 + $0x20] sm:$0xff]  ;;  %v817_v9 = vld [vmem:[%s1782_s3 + $0x28] sm:$0xff] }
  0x27   :  { %1148 = vmatmul.mubr.msk.f32.gmra.mrb[14].mxu1 %vm93_vm0, %v70_v37  ;;  %v1210_v7 = vpack.c.bf16 %v815_v6, %v814_v5  ;;  %v1213_v10 = vpack.c.bf16 %v817_v9, %v816_v8  ;;  %v818_v11 = vld [vmem:[%s1782_s3 + $0x30] sm:$0xff]  ;;  %v819_v12 = vld [vmem:[%s1782_s3 + $0x38] sm:$0xff]  ;;  %v820_v14 = vld [vmem:[%s1782_s3 + $0x40] sm:$0xff] }
  0x28   :  { %1103 = vmatmul.mubr.msk.f32.gmra.mrb[18].mxu0 %vm93_vm0, %v40_v35  ;;  %1150 = vmatprep.mubr.msk.f32.mxu1 %vm93_vm0, %v71_v38  ;;  %v1216_v13 = vpack.c.bf16 %v819_v12, %v818_v11  ;;  %v821_v15 = vld [vmem:[%s1782_s3 + $0x48] sm:$0xff]  ;;  %v1586_v17 = vld [vmem:[%s1781_s2] ss:$0 sm:$0xff]  ;;  %v822_v27 = vld [vmem:[%s1782_s3 + $0x50] sm:$0xff] }
  0x29   :  { %1105 = vmatprep.mubr.msk.f32.mxu0 %vm93_vm0, %v41_v36  ;;  %1208 = vmatpush3.bf16.msra.mxu1 %v1207_v4  ;;  %v1219_v16 = vpack.c.bf16 %v821_v15, %v820_v14  ;;  %v823_v28 = vld [vmem:[%s1782_s3 + $0x58] sm:$0xff]  ;;  %v824_v36 = vld [vmem:[%s1782_s3 + $0x60] sm:$0xff]  ;;  %v825_v37 = vld [vmem:[%s1782_s3 + $0x68] sm:$0xff] }
  0x2a   :  { %1209 = vmatprep.subr.bf16.mxu1 %v1260_v3  ;;  %v1222_v31 = vpack.c.bf16 %v823_v28, %v822_v27 }
  0x2b   :  { %1151 = vmatmul.mubr.msk.f32.gmra.mrb[16].mxu1 %vm93_vm0, %v72_v41 }
  0x2c   :  { %1106 = vmatmul.mubr.msk.f32.gmra.mrb[20].mxu0 %vm93_vm0, %v42_v39  ;;  %1153 = vmatprep.mubr.msk.f32.mxu1 %vm93_vm0, %v73_v42  ;;  %v1225_v42 = vpack.c.bf16 %v825_v37, %v824_v36 }
  0x2d   :  { %1108 = vmatprep.mubr.msk.f32.mxu0 %vm93_vm0, %v43_v40  ;;  %1211 = vmatpush3.bf16.msra.mxu1 %v1210_v7 }
  0x2e   :  { %1212 = vmatprep.subr.bf16.mxu1 %v1260_v3 }
  0x2f   :  { %1154 = vmatmul.mubr.msk.f32.gmra.mrb[18].mxu1 %vm93_vm0, %v74_v45 }
  0x30   :  { %1109 = vmatmul.mubr.msk.f32.gmra.mrb[22].mxu0 %vm93_vm0, %v44_v43  ;;  %1156 = vmatprep.mubr.msk.f32.mxu1 %vm93_vm0, %v75_v46 }
  0x31   :  { %1111 = vmatprep.mubr.msk.f32.mxu0 %vm93_vm0, %v45_v44  ;;  %1214 = vmatpush3.bf16.msra.mxu1 %v1213_v10 }
  0x32   :  { %1215 = vmatprep.subr.bf16.mxu1 %v1260_v3 }
  0x33   :  { %1157 = vmatmul.mubr.msk.f32.gmra.mrb[20].mxu1 %vm93_vm0, %v76_v49 }
  0x34   :  { %1112 = vmatmul.mubr.msk.f32.gmra.mrb[24].mxu0 %vm93_vm0, %v46_v47  ;;  %1159 = vmatprep.mubr.msk.f32.mxu1 %vm93_vm0, %v77_v50  ;;  %v826_v47 = vld [vmem:[%s1782_s3 + $0x70] sm:$0xff] }
  0x35   :  { %1114 = vmatprep.mubr.msk.f32.mxu0 %vm93_vm0, %v47_v48  ;;  %1217 = vmatpush3.bf16.msra.mxu1 %v1216_v13  ;;  %v827_v48 = vld [vmem:[%s1782_s3 + $0x78] sm:$0xff] }
  0x36   :  { %1218 = vmatprep.subr.bf16.mxu1 %v1260_v3  ;;  %v1228_v50 = vpack.c.bf16 %v827_v48, %v826_v47 }
  0x37   :  { %1160 = vmatmul.mubr.msk.f32.gmra.mrb[22].mxu1 %vm93_vm0, %v78_v53 }
  0x38   :  { %1115 = vmatmul.mubr.msk.f32.gmra.mrb[26].mxu0 %vm93_vm0, %v48_v51  ;;  %1162 = vmatprep.mubr.msk.f32.mxu1 %vm93_vm0, %v79_v54 }
  0x39   :  { %1117 = vmatprep.mubr.msk.f32.mxu0 %vm93_vm0, %v49_v52  ;;  %1220 = vmatpush3.bf16.msra.mxu1 %v1219_v16 }
  0x3a   :  { %1221 = vmatprep.subr.bf16.mxu1 %v1260_v3 }
  0x3b   :  { %1163 = vmatmul.mubr.msk.f32.gmra.mrb[24].mxu1 %vm93_vm0, %v80_v57 }
  0x3c   :  { %1118 = vmatmul.mubr.msk.f32.gmra.mrb[28].mxu0 %vm93_vm0, %v50_v55  ;;  %1165 = vmatprep.mubr.msk.f32.mxu1 %vm93_vm0, %v81_v58 }
  0x3d   :  { %1120 = vmatprep.mubr.msk.f32.mxu0 %vm93_vm0, %v51_v56  ;;  %1223 = vmatpush3.bf16.msra.mxu1 %v1222_v31  ;;  %v1262_v56 = vmov 0.0  }
  0x3e   :  { %1224 = vmatprep.subr.bf16.mxu1 %v1260_v3 }
  0x3f   :  { %1166 = vmatmul.mubr.msk.f32.gmra.mrb[26].mxu1 %vm93_vm0, %v82_v61 }
  0x40   :  { %1121 = vmatmul.mubr.msk.f32.gmra.mrb[30].mxu0 %vm93_vm0, %v52_v59  ;;  %1168 = vmatprep.mubr.msk.f32.mxu1 %vm93_vm0, %v83_v62 }
  0x41   :  { %1123 = vmatprep.mubr.msk.f32.mxu0 %vm93_vm0, %v53_v60  ;;  %1226 = vmatpush3.bf16.msra.mxu1 %v1225_v42 }
  0x42   :  { %1227 = vmatprep.subr.bf16.mxu1 %v1260_v3 }
  0x43   :  { %1169 = vmatmul.mubr.msk.f32.gmra.mrb[28].mxu1 %vm93_vm0, %v84_v0 }
  0x44   :  { %1124 = vmatmul.mubr.msk.f32.gmra.mrb[32].mxu0 %vm93_vm0, %v54_v63  ;;  %1203 = vmatprep.mubr.msk.f32.mxu1 %vm1261_vm1, %v1262_v56 }
  0x45   :  { %1229 = vmatpush3.bf16.msra.mxu1 %v1228_v50 }
  0xd7   :  { %v1077_v18 = vpop.f32.mrb[0].mxu0 }
  0xd8   :  { %v358_v19 = vadd.f32 %v1077_v18, %v1586_v17  ;;  %v352_v20 = vpop.f32.mrb[1].mxu0 }
  0xd9   :  { %v353_v21 = vadd.f32 %v1586_v17, %v352_v20  ;;  %v1606_v41 = vpop.f32.mrb[0].mxu1 }
  0xda   :  { %v672_v22 = vmax.f32 %v358_v19, 0.0  ;;  %v1608_v43 = vpop.f32.mrb[1].mxu1 }
  0xdb   :  { %v671_v23 = vmax.f32 %v353_v21, 0.0  ;;  %v1080_v24 = vpop.f32.mrb[2].mxu0 }
  0xdc   :  { %v368_v25 = vadd.f32 %v1080_v24, %v1586_v17  ;;  %v362_v26 = vpop.f32.mrb[3].mxu0 }
  0xdd   :  { %v735_v29 = vadd.f32 %v672_v22, %v671_v23  ;;  %v363_v30 = vadd.f32 %v1586_v17, %v362_v26  ;;  %v1618_v55 = vpop.f32.mrb[2].mxu1 }
  0xde   :  { %v674_v34 = vmax.f32 %v368_v25, 0.0  ;;  %v1620_v57 = vpop.f32.mrb[3].mxu1 }
  0xdf   :  { %v673_v32 = vmax.f32 %v363_v30, 0.0  ;;  %v1083_v33 = vpop.f32.mrb[4].mxu0 }
  0xe0   :  { %v372_v35 = vpop.f32.mrb[5].mxu0  ;;  %v378_v39 = vadd.f32 %v1083_v33, %v1586_v17 }
  0xe1   :  { %v736_v38 = vadd.f32 %v735_v29, %v673_v32  ;;  %v373_v40 = vadd.f32 %v1586_v17, %v372_v35  ;;  %v1624_v2 = vpop.f32.mrb[4].mxu1 }
  0xe2   :  { %v676_v51 = vmax.f32 %v378_v39, 0.0  ;;  %v1626_v3 = vpop.f32.mrb[5].mxu1 }
  0xe3   :  { %v675_v44 = vmax.f32 %v373_v40, 0.0  ;;  %v737_v45 = vadd.f32 %v736_v38, %v674_v34  ;;  %v1086_v46 = vpop.f32.mrb[6].mxu0 }
  0xe4   :  { %v382_v49 = vpop.f32.mrb[7].mxu0  ;;  %v388_v53 = vadd.f32 %v1086_v46, %v1586_v17 }
  0xe5   :  { %v738_v52 = vadd.f32 %v737_v45, %v675_v44  ;;  %v383_v54 = vadd.f32 %v1586_v17, %v382_v49 }
  0xe6   :  { %v678_v62 = vmax.f32 %v388_v53, 0.0 }
  0xe7   :  { %v677_v58 = vmax.f32 %v383_v54, 0.0  ;;  %v739_v59 = vadd.f32 %v738_v52, %v676_v51  ;;  %v1089_v60 = vpop.f32.mrb[8].mxu0 }
  0xe8   :  { %v392_v61 = vpop.f32.mrb[9].mxu0  ;;  %v398_v0 = vadd.f32 %v1089_v60, %v1586_v17 }
  0xe9   :  { %v740_v63 = vadd.f32 %v739_v59, %v677_v58  ;;  %v393_v1 = vadd.f32 %v1586_v17, %v392_v61 }
  0xea   :  { %v680_v8 = vmax.f32 %v398_v0, 0.0  ;;  %v1630_v12 = vpop.f32.mrb[6].mxu1 }
  0xeb   :  { %v679_v4 = vmax.f32 %v393_v1, 0.0  ;;  %v741_v5 = vadd.f32 %v740_v63, %v678_v62  ;;  %v1092_v6 = vpop.f32.mrb[10].mxu0  ;;  %v1632_v13 = vpop.f32.mrb[7].mxu1 }
  0xec   :  { %v402_v7 = vpop.f32.mrb[11].mxu0  ;;  %v408_v10 = vadd.f32 %v1092_v6, %v1586_v17 }
  0xed   :  { %v742_v9 = vadd.f32 %v741_v5, %v679_v4  ;;  %v403_v11 = vadd.f32 %v1586_v17, %v402_v7 }
  0xee   :  { %v682_v19 = vmax.f32 %v408_v10, 0.0  ;;  %v1636_v23 = vpop.f32.mrb[8].mxu1 }
  0xef   :  { %v681_v14 = vmax.f32 %v403_v11, 0.0  ;;  %v743_v15 = vadd.f32 %v742_v9, %v680_v8  ;;  %v1095_v16 = vpop.f32.mrb[12].mxu0  ;;  %v1638_v24 = vpop.f32.mrb[9].mxu1 }
  0xf0   :  { %v412_v18 = vpop.f32.mrb[13].mxu0  ;;  %v418_v21 = vadd.f32 %v1095_v16, %v1586_v17 }
  0xf1   :  { %v744_v20 = vadd.f32 %v743_v15, %v681_v14  ;;  %v413_v22 = vadd.f32 %v1586_v17, %v412_v18 }
  0xf2   :  { %v684_v29 = vmax.f32 %v418_v21, 0.0  ;;  %v1642_v33 = vpop.f32.mrb[10].mxu1 }
  0xf3   :  { %v683_v25 = vmax.f32 %v413_v22, 0.0  ;;  %v745_v26 = vadd.f32 %v744_v20, %v682_v19  ;;  %v1098_v27 = vpop.f32.mrb[14].mxu0  ;;  %v1644_v34 = vpop.f32.mrb[11].mxu1 }
  0xf4   :  { %v422_v28 = vpop.f32.mrb[15].mxu0  ;;  %v428_v31 = vadd.f32 %v1098_v27, %v1586_v17 }
  0xf5   :  { %v746_v30 = vadd.f32 %v745_v26, %v683_v25  ;;  %v423_v32 = vadd.f32 %v1586_v17, %v422_v28 }
  0xf6   :  { %v686_v39 = vmax.f32 %v428_v31, 0.0  ;;  %v1648_v45 = vpop.f32.mrb[12].mxu1 }
  0xf7   :  { %v685_v35 = vmax.f32 %v423_v32, 0.0  ;;  %v747_v36 = vadd.f32 %v746_v30, %v684_v29  ;;  %v1101_v37 = vpop.f32.mrb[16].mxu0  ;;  %v1650_v46 = vpop.f32.mrb[13].mxu1 }
  0xf8   :  { %v432_v38 = vpop.f32.mrb[17].mxu0  ;;  %v438_v42 = vadd.f32 %v1101_v37, %v1586_v17 }
  0xf9   :  { %v748_v40 = vadd.f32 %v747_v36, %v685_v35  ;;  %v433_v44 = vadd.f32 %v1586_v17, %v432_v38 }
  0xfa   :  { %v688_v51 = vmax.f32 %v438_v42, 0.0  ;;  %v1654_v56 = vpop.f32.mrb[14].mxu1 }
  0xfb   :  { %v687_v47 = vmax.f32 %v433_v44, 0.0  ;;  %v749_v48 = vadd.f32 %v748_v40, %v686_v39  ;;  %v1104_v49 = vpop.f32.mrb[18].mxu0  ;;  %v1656_v58 = vpop.f32.mrb[15].mxu1 }
  0xfc   :  { %v442_v50 = vpop.f32.mrb[19].mxu0  ;;  %v448_v53 = vadd.f32 %v1104_v49, %v1586_v17 }
  0xfd   :  { %v750_v52 = vadd.f32 %v749_v48, %v687_v47  ;;  %v443_v54 = vadd.f32 %v1586_v17, %v442_v50 }
  0xfe   :  { %v690_v63 = vmax.f32 %v448_v53, 0.0  ;;  %v1660_v5 = vpop.f32.mrb[16].mxu1 }
  0xff   :  { %v689_v59 = vmax.f32 %v443_v54, 0.0  ;;  %v751_v60 = vadd.f32 %v750_v52, %v688_v51  ;;  %v1107_v61 = vpop.f32.mrb[20].mxu0  ;;  %v1662_v6 = vpop.f32.mrb[17].mxu1 }
 0x100   :  { %v452_v62 = vpop.f32.mrb[21].mxu0  ;;  %v458_v1 = vadd.f32 %v1107_v61, %v1586_v17 }
 0x101   :  { %v752_v0 = vadd.f32 %v751_v60, %v689_v59  ;;  %v453_v4 = vadd.f32 %v1586_v17, %v452_v62 }
 0x102   :  { %v692_v11 = vmax.f32 %v458_v1, 0.0  ;;  %v1666_v18 = vpop.f32.mrb[18].mxu1 }
 0x103   :  { %v691_v7 = vmax.f32 %v453_v4, 0.0  ;;  %v753_v8 = vadd.f32 %v752_v0, %v690_v63  ;;  %v1110_v9 = vpop.f32.mrb[22].mxu0  ;;  %v1668_v19 = vpop.f32.mrb[19].mxu1 }
 0x104   :  { %v462_v10 = vpop.f32.mrb[23].mxu0  ;;  %v468_v15 = vadd.f32 %v1110_v9, %v1586_v17 }
 0x105   :  { %v754_v14 = vadd.f32 %v753_v8, %v691_v7  ;;  %v463_v16 = vadd.f32 %v1586_v17, %v462_v10 }
 0x106   :  { %v694_v26 = vmax.f32 %v468_v15, 0.0  ;;  %v1672_v30 = vpop.f32.mrb[20].mxu1 }
 0x107   :  { %v693_v20 = vmax.f32 %v463_v16, 0.0  ;;  %v755_v21 = vadd.f32 %v754_v14, %v692_v11  ;;  %v1113_v22 = vpop.f32.mrb[24].mxu0  ;;  %v1674_v31 = vpop.f32.mrb[21].mxu1 }
 0x108   :  { %v472_v25 = vpop.f32.mrb[25].mxu0  ;;  %v478_v28 = vadd.f32 %v1113_v22, %v1586_v17 }
 0x109   :  { %v756_v27 = vadd.f32 %v755_v21, %v693_v20  ;;  %v473_v29 = vadd.f32 %v1586_v17, %v472_v25  ;;  %v523_v20 = vadd.f32 %v1586_v17, %v1608_v43  ;;  %v533_v43 = vadd.f32 %v1586_v17, %v1620_v57 }
 0x10a   :  { %v696_v38 = vmax.f32 %v478_v28, 0.0  ;;  %v1678_v44 = vpop.f32.mrb[22].mxu1  ;;  %v553_v57 = vadd.f32 %v1586_v17, %v1632_v13  ;;  %v573_v13 = vadd.f32 %v1586_v17, %v1644_v34  ;;  %v593_v34 = vadd.f32 %v1586_v17, %v1656_v58 }
 0x10b   :  { %v695_v32 = vmax.f32 %v473_v29, 0.0  ;;  %v757_v35 = vadd.f32 %v756_v27, %v694_v26  ;;  %v1116_v36 = vpop.f32.mrb[26].mxu0  ;;  %v1680_v47 = vpop.f32.mrb[23].mxu1  ;;  %v613_v58 = vadd.f32 %v1586_v17, %v1668_v19 }
 0x10c   :  { %v482_v37 = vpop.f32.mrb[27].mxu0  ;;  %v488_v40 = vadd.f32 %v1116_v36, %v1586_v17  ;;  %v633_v19 = vadd.f32 %v1586_v17, %v1680_v47 }
 0x10d   :  { %v758_v39 = vadd.f32 %v757_v35, %v695_v32  ;;  %v483_v42 = vadd.f32 %v1586_v17, %v482_v37  ;;  %v528_v32 = vadd.f32 %v1606_v41, %v1586_v17 }
 0x10e   :  { %v698_v52 = vmax.f32 %v488_v40, 0.0  ;;  %v1684_v60 = vpop.f32.mrb[24].mxu1 }
 0x10f   :  { %v697_v48 = vmax.f32 %v483_v42, 0.0  ;;  %v759_v49 = vadd.f32 %v758_v39, %v696_v38  ;;  %v1119_v50 = vpop.f32.mrb[28].mxu0  ;;  %v1686_v61 = vpop.f32.mrb[25].mxu1  ;;  %v705_v38 = vmax.f32 %v523_v20, 0.0  ;;  %v706_v40 = vmax.f32 %v528_v32, 0.0 }
 0x110   :  { %v492_v51 = vpop.f32.mrb[29].mxu0  ;;  %v498_v54 = vadd.f32 %v1119_v50, %v1586_v17  ;;  %v543_v50 = vadd.f32 %v1586_v17, %v1626_v3  ;;  %v563_v3 = vadd.f32 %v1586_v17, %v1638_v24  ;;  %v583_v24 = vadd.f32 %v1586_v17, %v1650_v46 }
 0x111   :  { %v760_v53 = vadd.f32 %v759_v49, %v697_v48  ;;  %v493_v59 = vadd.f32 %v1586_v17, %v492_v51  ;;  %v538_v48 = vadd.f32 %v1618_v55, %v1586_v17  ;;  %v707_v49 = vmax.f32 %v533_v43, 0.0 }
 0x112   :  { %v700_v4 = vmax.f32 %v498_v54, 0.0  ;;  %v1690_v10 = vpop.f32.mrb[26].mxu1  ;;  %v548_v51 = vadd.f32 %v1624_v2, %v1586_v17  ;;  %v709_v54 = vmax.f32 %v543_v50, 0.0  ;;  %v558_v55 = vadd.f32 %v1630_v12, %v1586_v17 }
 0x113   :  { %v699_v62 = vmax.f32 %v493_v59, 0.0  ;;  %v761_v63 = vadd.f32 %v760_v53, %v698_v52  ;;  %v1122_v0 = vpop.f32.mrb[30].mxu0  ;;  %v1692_v11 = vpop.f32.mrb[27].mxu1  ;;  %v708_v52 = vmax.f32 %v538_v48, 0.0  ;;  %v568_v2 = vadd.f32 %v1636_v23, %v1586_v17 }
 0x114   :  { %v502_v1 = vpop.f32.mrb[31].mxu0  ;;  %v508_v8 = vadd.f32 %v1122_v0, %v1586_v17  ;;  %v711_v0 = vmax.f32 %v553_v57, 0.0  ;;  %v578_v12 = vadd.f32 %v1642_v33, %v1586_v17  ;;  %v588_v23 = vadd.f32 %v1648_v45, %v1586_v17 }
 0x115   :  { %v762_v7 = vadd.f32 %v761_v63, %v699_v62  ;;  %v503_v9 = vadd.f32 %v1586_v17, %v502_v1  ;;  %v710_v62 = vmax.f32 %v548_v51, 0.0  ;;  %v598_v33 = vadd.f32 %v1654_v56, %v1586_v17 }
 0x116   :  { %v702_v25 = vmax.f32 %v508_v8, 0.0  ;;  %v1698_v28 = vpop.f32.mrb[28].mxu1  ;;  %v713_v8 = vmax.f32 %v563_v3, 0.0  ;;  %v719_v32 = vmax.f32 %v593_v34, 0.0  ;;  %v603_v46 = vadd.f32 %v1586_v17, %v1662_v6 }
 0x117   :  { %v701_v14 = vmax.f32 %v503_v9, 0.0  ;;  %v763_v15 = vadd.f32 %v762_v7, %v700_v4  ;;  %v1125_v16 = vpop.f32.mrb[32].mxu0  ;;  %v1702_v35 = vpop.f32.mrb[29].mxu1  ;;  %v712_v4 = vmax.f32 %v558_v55, 0.0  ;;  %v608_v45 = vadd.f32 %v1660_v5, %v1586_v17 }
 0x118   :  { %v518_v21 = vadd.f32 %v1125_v16, %v1586_v17  ;;  %v512_v22 = vpop.f32.mrb[33].mxu0  ;;  %v715_v16 = vmax.f32 %v573_v13, 0.0  ;;  %v618_v56 = vadd.f32 %v1666_v18, %v1586_v17  ;;  %v623_v6 = vadd.f32 %v1586_v17, %v1674_v31 }
 0x119   :  { %v764_v26 = vadd.f32 %v763_v15, %v701_v14  ;;  %v513_v27 = vadd.f32 %v1586_v17, %v512_v22  ;;  %v714_v14 = vmax.f32 %v568_v2, 0.0  ;;  %v628_v5 = vadd.f32 %v1672_v30, %v1586_v17 }
 0x11a   :  { %v704_v29 = vmax.f32 %v518_v21, 0.0  ;;  %v716_v21 = vmax.f32 %v578_v12, 0.0  ;;  %v638_v18 = vadd.f32 %v1678_v44, %v1586_v17  ;;  %v643_v31 = vadd.f32 %v1586_v17, %v1686_v61 }
 0x11b   :  { %v1704_v36 = vadd.f32 %v764_v26, %v702_v25  ;;  %v703_v37 = vmax.f32 %v513_v27, 0.0  ;;  %v717_v25 = vmax.f32 %v583_v24, 0.0  ;;  %v718_v27 = vmax.f32 %v588_v23, 0.0 }
 0x11c   :  { %v648_v30 = vadd.f32 %v1684_v60, %v1586_v17  ;;  %v653_v47 = vadd.f32 %v1586_v17, %v1692_v11  ;;  %v658_v2 = vadd.f32 %v1690_v10, %v1586_v17  ;;  %v663_v61 = vadd.f32 %v1586_v17, %v1702_v35 }
 0x11d   :  { %v772_v39 = vadd.f32 %v704_v29, %v703_v37  ;;  %v766_v44 = vrot.slane %v1704_v36, 4  ;;  %v668_v11 = vadd.f32 %v1698_v28, %v1586_v17  ;;  %v990_v17 = vld [vmem:[%s1783_s4] ss:$0 sm:$0xff] }
 0x11e   :  { %v732_v60 = vmax.f32 %v658_v2, 0.0 }
 0x11f   :  { %v773_v42 = vadd.f32 %v772_v39, %v705_v38  ;;  %v720_v38 = vmax.f32 %v598_v33, 0.0  ;;  %v721_v39 = vmax.f32 %v603_v46, 0.0  ;;  %v767_v13 = vadd.f32 %v766_v44, %v1704_v36 }
 0x121   :  { %v774_v41 = vadd.f32 %v773_v42, %v706_v40  ;;  %v722_v42 = vmax.f32 %v608_v45, 0.0  ;;  %v768_v12 = vrot.slane %v767_v13, 2 }
 0x123   :  { %v775_v53 = vadd.f32 %v774_v41, %v707_v49  ;;  %v723_v49 = vmax.f32 %v613_v58, 0.0  ;;  %v724_v41 = vmax.f32 %v618_v56, 0.0 }
 0x125   :  { %v776_v59 = vadd.f32 %v775_v53, %v708_v52  ;;  %v725_v52 = vmax.f32 %v623_v6, 0.0 }
 0x127   :  { %v777_v63 = vadd.f32 %v776_v59, %v709_v54  ;;  %v726_v54 = vmax.f32 %v628_v5, 0.0  ;;  %v727_v59 = vmax.f32 %v633_v19, 0.0 }
 0x129   :  { %v778_v1 = vadd.f32 %v777_v63, %v710_v62  ;;  %v728_v63 = vmax.f32 %v638_v18, 0.0 }
 0x12b   :  { %v779_v7 = vadd.f32 %v778_v1, %v711_v0  ;;  %v729_v0 = vmax.f32 %v643_v31, 0.0  ;;  %v730_v1 = vmax.f32 %v648_v30, 0.0 }
 0x12d   :  { %v780_v9 = vadd.f32 %v779_v7, %v712_v4  ;;  %v731_v7 = vmax.f32 %v653_v47, 0.0 }
 0x12f   :  { %v781_v15 = vadd.f32 %v780_v9, %v713_v8 }
 0x131   :  { %v782_v20 = vadd.f32 %v781_v15, %v714_v14  ;;  %v733_v14 = vmax.f32 %v663_v61, 0.0 }
 0x133   :  { %v783_v22 = vadd.f32 %v782_v20, %v715_v16  ;;  %v734_v16 = vmax.f32 %v668_v11, 0.0  ;;  %v769_v20 = vadd.f32 %v768_v12, %v767_v13 }
 0x135   :  { %v784_v26 = vadd.f32 %v783_v22, %v716_v21  ;;  %v770_v22 = vrot.slane %v769_v20, 1 }
 0x137   :  { %v785_v29 = vadd.f32 %v784_v26, %v717_v25  ;;  %v771_v26 = vadd.f32 %v770_v22, %v769_v20 }
 0x139   :  { %v786_v37 = vadd.f32 %v785_v29, %v718_v27  ;;  %v810_v36 = vmul.f32 0.00390625, %v771_v26 }
 0x13b   :  { %v787_v43 = vadd.f32 %v786_v37, %v719_v32 }
 0x13d   :  { %v788_v40 = vadd.f32 %v787_v43, %v720_v38 }
 0x13f   :  { %v789_v48 = vadd.f32 %v788_v40, %v721_v39 }
 0x141   :  { %v790_v50 = vadd.f32 %v789_v48, %v722_v42 }
 0x143   :  { %v791_v51 = vadd.f32 %v790_v50, %v723_v49 }
 0x145   :  { %v792_v53 = vadd.f32 %v791_v51, %v724_v41 }
 0x147   :  { %v793_v57 = vadd.f32 %v792_v53, %v725_v52 }
 0x149   :  { %v794_v62 = vadd.f32 %v793_v57, %v726_v54 }
 0x14b   :  { %v795_v55 = vadd.f32 %v794_v62, %v727_v59 }
 0x14d   :  { %v796_v3 = vadd.f32 %v795_v55, %v728_v63 }
 0x14f   :  { %v797_v4 = vadd.f32 %v796_v3, %v729_v0 }
 0x151   :  { %v798_v8 = vadd.f32 %v797_v4, %v730_v1 }
 0x153   :  { %v799_v9 = vadd.f32 %v798_v8, %v731_v7 }
 0x155   :  { %v800_v15 = vadd.f32 %v799_v9, %v732_v60 }
 0x157   :  { %v801_v10 = vadd.f32 %v800_v15, %v733_v14 }
 0x159   :  { %v802_v24 = vadd.f32 %v801_v10, %v734_v16 }
 0x15b   :  { %v803_v23 = vrot.slane %v802_v24, 4 }
 0x15d   :  { %v804_v21 = vadd.f32 %v803_v23, %v802_v24 }
 0x15f   :  { %v805_v25 = vrot.slane %v804_v21, 2 }
 0x161   :  { %v806_v35 = vadd.f32 %v805_v25, %v804_v21 }
 0x163   :  { %v807_v34 = vrot.slane %v806_v35, 1 }
 0x165   :  { %v808_v27 = vadd.f32 %v807_v34, %v806_v35 }
 0x167   :  { %v811_v29 = vmul.f32 0.00390625, %v808_v27 }
 0x169   :  { %v838_v33 = vsel %vm837_vm2, %v811_v29, %v810_v36 }
 0x16a   :  { %1204 = vmatmul.mubr.f32.vlgmr.msra.gmra.mrb[30].mxu1 %v838_v33 }
 0x23d   :  { %v906_v28 = vpop.f32.mrb[30].mxu1 }
 0x23e   :  { %v907_v32 = vadd.f32 %v990_v17, %v906_v28  ;;  %v1205_v46 = vpop.f32.mrb[31].mxu1 }
 0x240   :  { %910 = vst [vmem:[#allocation2] sm:$0x3] %v907_v32 }
 0x241   :  { %1247 = shalt.err (!%p1244_p4)
}
 0x242   :  { %s1248_s28 = scalar_lea.hbm %s1784_s5, 32 }
 0x243   :  { %p1249_p5 = scmp.ne.s32.totalorder %s1784_s5, %s1248_s28  ;;  %p1252_p6 = scmp.lt.u32.totalorder %s1248_s28, %s1784_s5 }
 0x245   :  { %p1254_p7 = pnand %p1252_p6, %p1249_p5 }
 0x247   :  { %1257 = shalt.err (!%p1254_p7)
}
 0x248   :  { %920 = dma.vmem_to_hbm [thread:$0]  %s918_s25, 32, %s1784_s5, [#allocation3]  }
 0x249   :  { %1258 = dma.done.wait [#allocation3], 32  }
 0x24a   :  { %1259 = vsyncadd [#allocation3], 4294967264 }
 0x24b   :  { %924 = vsyncpa [#allocation3], 1 }

</bundles_post_ra>
